<compile_context>
chip_gen: v6e
topology: v6e:2x2x1
jax: 0.10.0
libtpu: 0.0.40
codegen_flags: <defaults>
</compile_context>

<pallas_src>
import math
from functools import partial

import jax
import jax.numpy as jnp
from jax.experimental import pallas as pl
from jax.experimental.pallas import tpu as pltpu


# --------------------------------------------------------------------------- #
# Kernel
# --------------------------------------------------------------------------- #
def _attn_kernel(x_ref, wkv_ref, bkv_ref, wq_ref, mask_ref, wo_ref, bo_ref,
                 o_ref, attn_ref, *, bt, S, E, D, T, G):
    """One batch block: fused K/V projection + attention + output projection."""
    W = G * D                            # lane width of one head group
    num_groups = wq_ref.shape[0]
    cdt = attn_ref.dtype                 # compute dtype (== activation dtype)

    # ---- fused K/V projection over all bt*S rows of this batch block -------
    x2 = x_ref[...].reshape(bt * S, E)                               # (bt*S, E)
    kv = jnp.dot(x2, wkv_ref[...], preferred_element_type=jnp.float32)
    kv = (kv + bkv_ref[...].astype(jnp.float32)).astype(cdt)        # (bt*S, 2E)

    # ---- attention: static loop over head groups (lane-aligned slices) -----
    for g in range(num_groups):
        k_g = kv[:, g * W:(g + 1) * W]                               # (bt*S, W)
        v_g = kv[:, E + g * W:E + (g + 1) * W]                       # (bt*S, W)

        # Tall score matmul (M = bt*S) for all G heads of the group at once
        # via the host-built block-diagonal (W, G*T) query matrix (the 1/sqrt(D)
        # scale is already folded in).  No q broadcast, no k.T.
        s = jnp.dot(k_g, wq_ref[g], preferred_element_type=jnp.float32)
        s = s.reshape(bt, S, G * T)                                  # keys on axis=1
        m = jnp.max(s, axis=1, keepdims=True)                        # (bt, 1, G*T)
        p = jnp.exp(s - m)
        l = jnp.sum(p, axis=1, keepdims=True)                        # (bt, 1, G*T)

        # EUP approximate reciprocal + one Newton step (~f32 accuracy, tiny).
        inv = pl.reciprocal(l, approx=True)
        inv = inv * (2.0 - l * inv)
        p = (p * inv).astype(cdt)                                    # normalized probs

        # PV matmul, batched over bt (M = G*T rows per batch element).
        o_full = jnp.einsum('bst,bsd->btd', p, v_g.reshape(bt, S, W),
                            preferred_element_type=jnp.float32)      # (bt, G*T, W)

        # Keep each head's own D-wide column block (mask-sum over the group
        # dim) so the store below is one lane-dense W-wide store, not G masked
        # D-wide stores.
        o4 = o_full.reshape(bt, G, T, W)
        msk = mask_ref[g].astype(jnp.float32)[None, :, None, :]      # (1, G, 1, W)
        o_grp = jnp.sum(o4 * msk, axis=1)                            # (bt, T, W)
        attn_ref[:, g * W:(g + 1) * W] = o_grp.reshape(bt * T, W).astype(cdt)

    # ---- output projection on the (bt*T, E) slab, lane-dense 2-D store -----
    out = jnp.dot(attn_ref[...], wo_ref[...], preferred_element_type=jnp.float32)
    out = out + bo_ref[...].astype(jnp.float32)                      # (bt*T, O_pad)
    o_ref[...] = out.astype(o_ref.dtype)


# --------------------------------------------------------------------------- #
# Host-side helpers
# --------------------------------------------------------------------------- #
def scrambled_queries(query_tokens, num_heads, head_dim):
    """Reproduce the double `_shape` the module applies to the query tokens."""
    T, _ = query_tokens.shape
    q1 = query_tokens.reshape(T, num_heads, head_dim).transpose(1, 0, 2)
    q2 = q1.reshape(T, num_heads, head_dim).transpose(1, 0, 2)
    return q2                                                        # (H, T, D)


def _round_up(x, m):
    return ((x + m - 1) // m) * m


def _build_call(kernel, B, S, E, T, O_pad, bt, NG, G, W, cdt, vmem_limit,
                single_buffer_weights):
    def const_spec(shape):
        if len(shape) == 2:
            idx = lambda b: (0, 0)
        else:
            idx = lambda b: (0, 0, 0)
        if single_buffer_weights:
            return pl.BlockSpec(shape, idx, pipeline_mode=pl.Buffered(1))
        return pl.BlockSpec(shape, idx)

    return pl.pallas_call(
        kernel,
        out_shape=jax.ShapeDtypeStruct((B * T, O_pad), cdt),
        grid_spec=pltpu.PrefetchScalarGridSpec(
            num_scalar_prefetch=0,
            grid=(B // bt,),
            in_specs=[
                pl.BlockSpec((bt, S, E), lambda b: (b, 0, 0)),       # x
                const_spec((E, 2 * E)),                              # [wk|wv]^T
                const_spec((1, 2 * E)),                              # [bk|bv]
                const_spec((NG, W, G * T)),                          # block-diag q
                const_spec((NG, G, W)),                              # head-group mask
                const_spec((E, O_pad)),                              # wo^T (padded)
                const_spec((1, O_pad)),                              # bo  (padded)
            ],
            out_specs=pl.BlockSpec((bt * T, O_pad), lambda b: (b, 0)),
            scratch_shapes=[pltpu.VMEM((bt * T, E), cdt)],
        ),
        compiler_params=pltpu.CompilerParams(
            dimension_semantics=("parallel",),
            vmem_limit_bytes=vmem_limit),
    )


def learnable_queries_attention(hidden_states, params, *, num_heads,
                                batch_block=None):
    """hidden_states: (B, S, E)."""
    B, S, E = hidden_states.shape
    H = num_heads
    assert E % H == 0, "embed_dim must be divisible by num_heads"
    D = E // H
    T = params["query_tokens"].shape[0]
    O = params["wo"].shape[0]                                        # out_dim
    O_pad = _round_up(O, 128)                                        # lane-dense out
    cdt = hidden_states.dtype
    isz = jnp.dtype(cdt).itemsize

    # Head grouping: fold G heads into one (G*D)-lane-wide slice so kv slices
    # and attn-scratch stores are 128-lane aligned whenever possible.
    if D < 128 and 128 % D == 0:
        G = min(H, 128 // D)
        while H % G:
            G -= 1
    else:
        G = 1
    W = G * D
    NG = H // G

    # ---- host-side parameter prep -------------------------------------------
    scale = 1.0 / math.sqrt(D)
    q_scr = scrambled_queries(params["query_tokens"].astype(jnp.float32), H, D)
    q4 = q_scr.reshape(NG, G, T, D) * scale
    # block-diagonal scaled queries, one (W, G*T) block per head group
    wq = jnp.einsum('gjtd,jk->gjdkt', q4, jnp.eye(G, dtype=jnp.float32))
    wq = wq.reshape(NG, W, G * T).astype(cdt)
    # mask selecting each head's own D-wide column block inside its group
    colh = jnp.arange(W) // D
    mask = (colh[None, :] == jnp.arange(G)[:, None]).astype(jnp.float32)
    mask = jnp.broadcast_to(mask[None], (NG, G, W))

    # torch Linear: y = x @ W.T + b ; K and V fused into a single (E, 2E) weight.
    wkv = jnp.concatenate([params["wk"].T, params["wv"].T], axis=1).astype(cdt)
    bkv = jnp.concatenate([params["bk"], params["bv"]]).reshape(1, 2 * E).astype(cdt)
    wo_t = params["wo"].T.astype(cdt)
    bo = params["bo"].reshape(1, O).astype(cdt)
    if O_pad != O:
        wo_t = jnp.pad(wo_t, ((0, 0), (0, O_pad - O)))
        bo = jnp.pad(bo, ((0, 0), (0, O_pad - O)))

    # ---- VMEM budget & batch-block selection ---------------------------------
    try:
        vmem_cap = int(pltpu.get_tpu_info().vmem_capacity_bytes)
    except Exception:
        vmem_cap = 64 * 1024 * 1024          # conservative: safe on every gen
    budget = int(vmem_cap * 0.8)             # ~100 MiB on v5e/v6e, ~51 MiB on v7x

    weight_bytes = 2 * ((wkv.size + bkv.size + wo_t.size + bo.size + wq.size) * isz
                        + mask.size * 4)     # x2: double-buffer worst case

    def _block_bytes(bt):
        moving = 2 * (bt * S * E + bt * T * O_pad) * isz             # pipelined I/O
        scratch = bt * T * E * isz                                   # attn slab
        tmps = (bt * S * 2 * E * (4 + isz)                           # kv f32 + cast
                + 2 * bt * S * G * T * 4                             # scores + probs
                + bt * G * T * W * 4)                                # PV result
        return moving + scratch + tmps

    if batch_block is not None:
        bt = batch_block
        assert B % bt == 0
    else:
        avail = max(budget - weight_bytes, 0)
        divs = [d for d in range(1, B + 1) if B % d == 0]
        legal = [d for d in divs if (d * T) % 8 == 0 or d == B] or [B]
        fits = [d for d in legal if _block_bytes(d) <= avail] or [min(legal)]
        pref = [d for d in fits if B // d >= 2] or fits              # >=2 grid steps
        tall = [d for d in pref if d * S >= 256]                     # MXU row fill
        bt = min(tall) if tall else max(pref)

    vmem_limit = max(budget, 32 * 1024 * 1024)
    # TODO(synk): for very large E (resident weights exceed the VMEM budget),
    # stream the KV-projection weight over its output columns (emit_pipeline /
    # extra grid axis) and use an online softmax over S chunks for huge S.

    kernel = partial(_attn_kernel, bt=bt, S=S, E=E, D=D, T=T, G=G)
    args = (hidden_states, wkv, bkv, wq, mask, wo_t, bo)

    out_flat = None
    for single_buffer in (True, False):       # Buffered(1) on weights, with fallback
        try:
            call = _build_call(kernel, B, S, E, T, O_pad, bt, NG, G, W, cdt,
                               vmem_limit, single_buffer)
            out_flat = jax.block_until_ready(call(*args))
            break
        except Exception:
            if not single_buffer:
                raise

    out = out_flat.reshape(B, T, O_pad)
    return out[..., :O] if O_pad != O else out


# --------------------------------------------------------------------------- #
# Pure-JAX reference (mirrors the PyTorch forward exactly)
# --------------------------------------------------------------------------- #
def reference_forward(hidden_states, params, *, num_heads):
    B, S, E = hidden_states.shape
    D = E // num_heads
    T = params["query_tokens"].shape[0]

    q = scrambled_queries(params["query_tokens"], num_heads, D)      # (H, T, D)
    q = jnp.broadcast_to(q[None], (B, num_heads, T, D))

    k = hidden_states @ params["wk"].T + params["bk"]
    v = hidden_states @ params["wv"].T + params["bv"]
    k = k.reshape(B, S, num_heads, D).transpose(0, 2, 1, 3)          # (B, H, S, D)
    v = v.reshape(B, S, num_heads, D).transpose(0, 2, 1, 3)

    s = jnp.einsum("bhtd,bhsd->bhts", q, k) / math.sqrt(D)
    p = jax.nn.softmax(s, axis=-1)
    o = jnp.einsum("bhts,bhsd->bhtd", p, v)                          # (B, H, T, D)
    o = o.transpose(0, 2, 1, 3).reshape(B, T, E)
    return o @ params["wo"].T + params["bo"]


if __name__ == "__main__":
    # Small, module-consistent shapes.
    B, S, E = 2, 16, 32          # batch, sequence, embed_dim
    H, T = 4, 8                  # num_heads, num_queries
    O = E                        # out_dim (None -> embed_dim), linear=True, bias=True
    # TODO(synk): dropout path not implemented (module default dropout=0.0).

    key = jax.random.PRNGKey(0)
    ks = jax.random.split(key, 8)
    params = {
        "query_tokens": jax.random.normal(ks[0], (T, E), jnp.float32),
        "wk": jax.random.normal(ks[1], (E, E), jnp.float32) / math.sqrt(E),
        "bk": jax.random.normal(ks[2], (E,), jnp.float32) * 0.1,
        "wv": jax.random.normal(ks[3], (E, E), jnp.float32) / math.sqrt(E),
        "bv": jax.random.normal(ks[4], (E,), jnp.float32) * 0.1,
        "wo": jax.random.normal(ks[5], (O, E), jnp.float32) / math.sqrt(E),
        "bo": jax.random.normal(ks[6], (O,), jnp.float32) * 0.1,
    }
    x = jax.random.normal(ks[7], (B, S, E), jnp.float32)

    out = learnable_queries_attention(x, params, num_heads=H)
    out = jax.block_until_ready(out)

    ref = reference_forward(x, params, num_heads=H)
    assert out.shape == (B, T, O), out.shape
    # 2e-3 tolerance: softmax denominator uses the EUP approximate reciprocal
    # (+ one Newton step); all matmuls accumulate in f32.
    err = float(jnp.max(jnp.abs(out - ref)))
    assert err < 2e-3, err

    print("KERNEL_OK")
</pallas_src>

<mosaic_0001>
module attributes {stable_mosaic.version = 11 : i64} {
  func.func @_attn_kernel(%arg0: i32, %arg1: memref<1x16x32xf32, #tpu.memory_space<vmem>>, %arg2: memref<32x64xf32, #tpu.memory_space<vmem>>, %arg3: memref<1x64xf32, #tpu.memory_space<vmem>>, %arg4: memref<1x32x32xf32, #tpu.memory_space<vmem>>, %arg5: memref<1x4x32xf32, #tpu.memory_space<vmem>>, %arg6: memref<32x128xf32, #tpu.memory_space<vmem>>, %arg7: memref<1x128xf32, #tpu.memory_space<vmem>>, %arg8: memref<8x128xf32, #tpu.memory_space<vmem>>, %arg9: memref<8x32xf32, #tpu.memory_space<vmem>>) attributes {dimension_semantics = [#tpu.dimension_semantics<parallel>], iteration_bounds = array<i64: 2>, scalar_prefetch = 0 : i64, scratch_operands = 1 : i64, tpu.core_type = #tpu.core_type<tc>, window_params = [{transform_indices = @transform_0, window_bounds = array<i64: 1, 16, 32>}, {pipeline_mode = #tpu.pipeline_mode<synchronous>, transform_indices = @transform_1, window_bounds = array<i64: 32, 64>}, {pipeline_mode = #tpu.pipeline_mode<synchronous>, transform_indices = @transform_2, window_bounds = array<i64: 1, 64>}, {pipeline_mode = #tpu.pipeline_mode<synchronous>, transform_indices = @transform_3, window_bounds = array<i64: 1, 32, 32>}, {pipeline_mode = #tpu.pipeline_mode<synchronous>, transform_indices = @transform_4, window_bounds = array<i64: 1, 4, 32>}, {pipeline_mode = #tpu.pipeline_mode<synchronous>, transform_indices = @transform_5, window_bounds = array<i64: 32, 128>}, {pipeline_mode = #tpu.pipeline_mode<synchronous>, transform_indices = @transform_6, window_bounds = array<i64: 1, 128>}, {transform_indices = @transform_7, window_bounds = array<i64: 8, 128>}]} {
    %c0 = arith.constant 0 : index
    %c0_0 = arith.constant 0 : index
    %c0_1 = arith.constant 0 : index
    %0 = vector.load %arg1[%c0, %c0_0, %c0_1] : memref<1x16x32xf32, #tpu.memory_space<vmem>>, vector<1x16x32xf32>
    %1 = vector.shape_cast %0 : vector<1x16x32xf32> to vector<16x32xf32>
    %c0_2 = arith.constant 0 : index
    %c0_3 = arith.constant 0 : index
    %2 = vector.load %arg2[%c0_2, %c0_3] : memref<32x64xf32, #tpu.memory_space<vmem>>, vector<32x64xf32>
    %cst = arith.constant dense<0.000000e+00> : vector<16x64xf32>
    %3 = tpu.matmul %1, %2, %cst {dimension_numbers = #tpu.dot_dimension_numbers<[1], [0], [0], [1], [0, 0, 1, 1], [], []>} : vector<16x32xf32>, vector<32x64xf32>, vector<16x64xf32> -> vector<16x64xf32>
    %c0_4 = arith.constant 0 : index
    %c0_5 = arith.constant 0 : index
    %4 = vector.load %arg3[%c0_4, %c0_5] : memref<1x64xf32, #tpu.memory_space<vmem>>, vector<1x64xf32>
    %5 = vector.broadcast %4 : vector<1x64xf32> to vector<16x64xf32>
    %6 = arith.addf %3, %5 : vector<16x64xf32>
    %7 = vector.extract_strided_slice %6 {offsets = [0, 0], sizes = [16, 32], strides = [1, 1]} : vector<16x64xf32> to vector<16x32xf32>
    %8 = vector.extract_strided_slice %6 {offsets = [0, 32], sizes = [16, 32], strides = [1, 1]} : vector<16x64xf32> to vector<16x32xf32>
    %c0_6 = arith.constant 0 : index
    %c0_7 = arith.constant 0 : index
    %c0_8 = arith.constant 0 : index
    %9 = vector.load %arg4[%c0_6, %c0_7, %c0_8] : memref<1x32x32xf32, #tpu.memory_space<vmem>>, vector<1x32x32xf32>
    %10 = vector.shape_cast %9 : vector<1x32x32xf32> to vector<32x32xf32>
    %cst_9 = arith.constant dense<0.000000e+00> : vector<16x32xf32>
    %11 = tpu.matmul %7, %10, %cst_9 {dimension_numbers = #tpu.dot_dimension_numbers<[1], [0], [0], [1], [0, 0, 1, 1], [], []>} : vector<16x32xf32>, vector<32x32xf32>, vector<16x32xf32> -> vector<16x32xf32>
    %12 = vector.shape_cast %11 : vector<16x32xf32> to vector<1x16x32xf32>
    %cst_10 = arith.constant dense<0xFF800000> : vector<1x32xf32>
    %13 = vector.multi_reduction <maximumf>, %12, %cst_10 [1] : vector<1x16x32xf32> to vector<1x32xf32>
    %14 = vector.shape_cast %13 : vector<1x32xf32> to vector<1x1x32xf32>
    %15 = vector.broadcast %14 : vector<1x1x32xf32> to vector<1x16x32xf32>
    %16 = arith.subf %12, %15 : vector<1x16x32xf32>
    %17 = math.exp %16 : vector<1x16x32xf32>
    %cst_11 = arith.constant dense<0.000000e+00> : vector<1x32xf32>
    %18 = vector.multi_reduction <add>, %17, %cst_11 [1] : vector<1x16x32xf32> to vector<1x32xf32>
    %19 = vector.shape_cast %18 : vector<1x32xf32> to vector<1x1x32xf32>
    %20 = tpu.reciprocal %19 {approx = true} : vector<1x1x32xf32> -> vector<1x1x32xf32>
    %21 = arith.mulf %19, %20 : vector<1x1x32xf32>
    %cst_12 = arith.constant 2.000000e+00 : f32
    %22 = vector.broadcast %cst_12 : f32 to vector<1x1x32xf32>
    %23 = arith.subf %22, %21 : vector<1x1x32xf32>
    %24 = arith.mulf %20, %23 : vector<1x1x32xf32>
    %25 = vector.broadcast %24 : vector<1x1x32xf32> to vector<1x16x32xf32>
    %26 = arith.mulf %17, %25 : vector<1x16x32xf32>
    %27 = vector.shape_cast %8 : vector<16x32xf32> to vector<1x16x32xf32>
    "tpu.trace_start"() <{level = 10 : i32, message = "bst,bsd->btd"}> : () -> ()
    %cst_13 = arith.constant dense<0.000000e+00> : vector<1x32x32xf32>
    %28 = tpu.matmul %26, %27, %cst_13 {dimension_numbers = #tpu.dot_dimension_numbers<[1], [1], [2], [2], [0, 0, 0, 2, 1, 2], [0], [0]>} : vector<1x16x32xf32>, vector<1x16x32xf32>, vector<1x32x32xf32> -> vector<1x32x32xf32>
    "tpu.trace_stop"() : () -> ()
    %29 = vector.shape_cast %28 : vector<1x32x32xf32> to vector<1x4x8x32xf32>
    %c0_14 = arith.constant 0 : index
    %c0_15 = arith.constant 0 : index
    %c0_16 = arith.constant 0 : index
    %30 = vector.load %arg5[%c0_14, %c0_15, %c0_16] : memref<1x4x32xf32, #tpu.memory_space<vmem>>, vector<1x4x32xf32>
    %31 = vector.shape_cast %30 : vector<1x4x32xf32> to vector<4x32xf32>
    %32 = vector.shape_cast %31 : vector<4x32xf32> to vector<1x4x1x32xf32>
    %33 = vector.broadcast %32 : vector<1x4x1x32xf32> to vector<1x4x8x32xf32>
    %34 = arith.mulf %29, %33 : vector<1x4x8x32xf32>
    %cst_17 = arith.constant dense<0.000000e+00> : vector<1x8x32xf32>
    %35 = vector.multi_reduction <add>, %34, %cst_17 [1] : vector<1x4x8x32xf32> to vector<1x8x32xf32>
    %36 = vector.shape_cast %35 : vector<1x8x32xf32> to vector<8x32xf32>
    %c0_18 = arith.constant 0 : index
    %c0_19 = arith.constant 0 : index
    %37 = vector.load %arg9[%c0_18, %c0_19] : memref<8x32xf32, #tpu.memory_space<vmem>>, vector<8x32xf32>
    tpu.vector_store %arg9[%c0_18, %c0_19], %36 {strides = array<i32>} : memref<8x32xf32, #tpu.memory_space<vmem>>, vector<8x32xf32>,
    %c0_20 = arith.constant 0 : index
    %c0_21 = arith.constant 0 : index
    %38 = vector.load %arg9[%c0_20, %c0_21] : memref<8x32xf32, #tpu.memory_space<vmem>>, vector<8x32xf32>
    %c0_22 = arith.constant 0 : index
    %c0_23 = arith.constant 0 : index
    %39 = vector.load %arg6[%c0_22, %c0_23] : memref<32x128xf32, #tpu.memory_space<vmem>>, vector<32x128xf32>
    %cst_24 = arith.constant dense<0.000000e+00> : vector<8x128xf32>
    %40 = tpu.matmul %38, %39, %cst_24 {dimension_numbers = #tpu.dot_dimension_numbers<[1], [0], [0], [1], [0, 0, 1, 1], [], []>} : vector<8x32xf32>, vector<32x128xf32>, vector<8x128xf32> -> vector<8x128xf32>
    %c0_25 = arith.constant 0 : index
    %c0_26 = arith.constant 0 : index
    %41 = vector.load %arg7[%c0_25, %c0_26] : memref<1x128xf32, #tpu.memory_space<vmem>>, vector<1x128xf32>
    %42 = vector.broadcast %41 : vector<1x128xf32> to vector<8x128xf32>
    %43 = arith.addf %40, %42 : vector<8x128xf32>
    %c0_27 = arith.constant 0 : index
    %c0_28 = arith.constant 0 : index
    %44 = vector.load %arg8[%c0_27, %c0_28] : memref<8x128xf32, #tpu.memory_space<vmem>>, vector<8x128xf32>
    tpu.vector_store %arg8[%c0_27, %c0_28], %43 {strides = array<i32>} : memref<8x128xf32, #tpu.memory_space<vmem>>, vector<8x128xf32>,
    return
  }
  func.func @transform_0(%arg0: i32) -> (i32, i32, i32) {
    %c0_i32 = arith.constant 0 : i32
    %c0_i32_0 = arith.constant 0 : i32
    %c0_i32_1 = arith.constant 0 : i32
    return %arg0, %c0_i32, %c0_i32_0 : i32, i32, i32
  }
  func.func @transform_1(%arg0: i32) -> (i32, i32) {
    %c0_i32 = arith.constant 0 : i32
    %c0_i32_0 = arith.constant 0 : i32
    %c0_i32_1 = arith.constant 0 : i32
    return %c0_i32, %c0_i32_0 : i32, i32
  }
  func.func @transform_2(%arg0: i32) -> (i32, i32) {
    %c0_i32 = arith.constant 0 : i32
    %c0_i32_0 = arith.constant 0 : i32
    %c0_i32_1 = arith.constant 0 : i32
    return %c0_i32, %c0_i32_0 : i32, i32
  }
  func.func @transform_3(%arg0: i32) -> (i32, i32, i32) {
    %c0_i32 = arith.constant 0 : i32
    %c0_i32_0 = arith.constant 0 : i32
    %c0_i32_1 = arith.constant 0 : i32
    %c0_i32_2 = arith.constant 0 : i32
    return %c0_i32, %c0_i32_0, %c0_i32_1 : i32, i32, i32
  }
  func.func @transform_4(%arg0: i32) -> (i32, i32, i32) {
    %c0_i32 = arith.constant 0 : i32
    %c0_i32_0 = arith.constant 0 : i32
    %c0_i32_1 = arith.constant 0 : i32
    %c0_i32_2 = arith.constant 0 : i32
    return %c0_i32, %c0_i32_0, %c0_i32_1 : i32, i32, i32
  }
  func.func @transform_5(%arg0: i32) -> (i32, i32) {
    %c0_i32 = arith.constant 0 : i32
    %c0_i32_0 = arith.constant 0 : i32
    %c0_i32_1 = arith.constant 0 : i32
    return %c0_i32, %c0_i32_0 : i32, i32
  }
  func.func @transform_6(%arg0: i32) -> (i32, i32) {
    %c0_i32 = arith.constant 0 : i32
    %c0_i32_0 = arith.constant 0 : i32
    %c0_i32_1 = arith.constant 0 : i32
    return %c0_i32, %c0_i32_0 : i32, i32
  }
  func.func @transform_7(%arg0: i32) -> (i32, i32) {
    %c0_i32 = arith.constant 0 : i32
    %c0_i32_0 = arith.constant 0 : i32
    return %arg0, %c0_i32 : i32, i32
  }
}

module attributes {stable_mosaic.version = 11 : i64} {
  func.func @_attn_kernel(%arg0: i32, %arg1: memref<1x16x32xf32, #tpu.memory_space<vmem>>, %arg2: memref<32x64xf32, #tpu.memory_space<vmem>>, %arg3: memref<1x64xf32, #tpu.memory_space<vmem>>, %arg4: memref<1x32x32xf32, #tpu.memory_space<vmem>>, %arg5: memref<1x4x32xf32, #tpu.memory_space<vmem>>, %arg6: memref<32x128xf32, #tpu.memory_space<vmem>>, %arg7: memref<1x128xf32, #tpu.memory_space<vmem>>, %arg8: memref<8x128xf32, #tpu.memory_space<vmem>>, %arg9: memref<8x32xf32, #tpu.memory_space<vmem>>) attributes {dimension_semantics = [#tpu.dimension_semantics<parallel>], iteration_bounds = array<i64: 2>, scalar_prefetch = 0 : i64, scratch_operands = 1 : i64, tpu.core_type = #tpu.core_type<tc>, window_params = [{transform_indices = @transform_0, window_bounds = array<i64: 1, 16, 32>}, {pipeline_mode = #tpu.pipeline_mode<synchronous>, transform_indices = @transform_1, window_bounds = array<i64: 32, 64>}, {pipeline_mode = #tpu.pipeline_mode<synchronous>, transform_indices = @transform_2, window_bounds = array<i64: 1, 64>}, {pipeline_mode = #tpu.pipeline_mode<synchronous>, transform_indices = @transform_3, window_bounds = array<i64: 1, 32, 32>}, {pipeline_mode = #tpu.pipeline_mode<synchronous>, transform_indices = @transform_4, window_bounds = array<i64: 1, 4, 32>}, {pipeline_mode = #tpu.pipeline_mode<synchronous>, transform_indices = @transform_5, window_bounds = array<i64: 32, 128>}, {pipeline_mode = #tpu.pipeline_mode<synchronous>, transform_indices = @transform_6, window_bounds = array<i64: 1, 128>}, {transform_indices = @transform_7, window_bounds = array<i64: 8, 128>}]} {
    %c0 = arith.constant 0 : index
    %c0_0 = arith.constant 0 : index
    %c0_1 = arith.constant 0 : index
    %0 = vector.load %arg1[%c0, %c0_0, %c0_1] : memref<1x16x32xf32, #tpu.memory_space<vmem>>, vector<1x16x32xf32>
    %1 = vector.shape_cast %0 : vector<1x16x32xf32> to vector<16x32xf32>
    %c0_2 = arith.constant 0 : index
    %c0_3 = arith.constant 0 : index
    %2 = vector.load %arg2[%c0_2, %c0_3] : memref<32x64xf32, #tpu.memory_space<vmem>>, vector<32x64xf32>
    %cst = arith.constant dense<0.000000e+00> : vector<16x64xf32>
    %3 = tpu.matmul %1, %2, %cst {dimension_numbers = #tpu.dot_dimension_numbers<[1], [0], [0], [1], [0, 0, 1, 1], [], []>} : vector<16x32xf32>, vector<32x64xf32>, vector<16x64xf32> -> vector<16x64xf32>
    %c0_4 = arith.constant 0 : index
    %c0_5 = arith.constant 0 : index
    %4 = vector.load %arg3[%c0_4, %c0_5] : memref<1x64xf32, #tpu.memory_space<vmem>>, vector<1x64xf32>
    %5 = vector.broadcast %4 : vector<1x64xf32> to vector<16x64xf32>
    %6 = arith.addf %3, %5 : vector<16x64xf32>
    %7 = vector.extract_strided_slice %6 {offsets = [0, 0], sizes = [16, 32], strides = [1, 1]} : vector<16x64xf32> to vector<16x32xf32>
    %8 = vector.extract_strided_slice %6 {offsets = [0, 32], sizes = [16, 32], strides = [1, 1]} : vector<16x64xf32> to vector<16x32xf32>
    %c0_6 = arith.constant 0 : index
    %c0_7 = arith.constant 0 : index
    %c0_8 = arith.constant 0 : index
    %9 = vector.load %arg4[%c0_6, %c0_7, %c0_8] : memref<1x32x32xf32, #tpu.memory_space<vmem>>, vector<1x32x32xf32>
    %10 = vector.shape_cast %9 : vector<1x32x32xf32> to vector<32x32xf32>
    %cst_9 = arith.constant dense<0.000000e+00> : vector<16x32xf32>
    %11 = tpu.matmul %7, %10, %cst_9 {dimension_numbers = #tpu.dot_dimension_numbers<[1], [0], [0], [1], [0, 0, 1, 1], [], []>} : vector<16x32xf32>, vector<32x32xf32>, vector<16x32xf32> -> vector<16x32xf32>
    %12 = vector.shape_cast %11 : vector<16x32xf32> to vector<1x16x32xf32>
    %cst_10 = arith.constant dense<0xFF800000> : vector<1x32xf32>
    %13 = vector.multi_reduction <maximumf>, %12, %cst_10 [1] : vector<1x16x32xf32> to vector<1x32xf32>
    %14 = vector.shape_cast %13 : vector<1x32xf32> to vector<1x1x32xf32>
    %15 = vector.broadcast %14 : vector<1x1x32xf32> to vector<1x16x32xf32>
    %16 = arith.subf %12, %15 : vector<1x16x32xf32>
    %17 = math.exp %16 : vector<1x16x32xf32>
    %cst_11 = arith.constant dense<0.000000e+00> : vector<1x32xf32>
    %18 = vector.multi_reduction <add>, %17, %cst_11 [1] : vector<1x16x32xf32> to vector<1x32xf32>
    %19 = vector.shape_cast %18 : vector<1x32xf32> to vector<1x1x32xf32>
    %20 = tpu.reciprocal %19 {approx = true} : vector<1x1x32xf32> -> vector<1x1x32xf32>
    %21 = arith.mulf %19, %20 : vector<1x1x32xf32>
    %cst_12 = arith.constant 2.000000e+00 : f32
    %22 = vector.broadcast %cst_12 : f32 to vector<1x1x32xf32>
    %23 = arith.subf %22, %21 : vector<1x1x32xf32>
    %24 = arith.mulf %20, %23 : vector<1x1x32xf32>
    %25 = vector.broadcast %24 : vector<1x1x32xf32> to vector<1x16x32xf32>
    %26 = arith.mulf %17, %25 : vector<1x16x32xf32>
    %27 = vector.shape_cast %8 : vector<16x32xf32> to vector<1x16x32xf32>
    "tpu.trace_start"() <{level = 10 : i32, message = "bst,bsd->btd"}> : () -> ()
    %cst_13 = arith.constant dense<0.000000e+00> : vector<1x32x32xf32>
    %28 = tpu.matmul %26, %27, %cst_13 {dimension_numbers = #tpu.dot_dimension_numbers<[1], [1], [2], [2], [0, 0, 0, 2, 1, 2], [0], [0]>} : vector<1x16x32xf32>, vector<1x16x32xf32>, vector<1x32x32xf32> -> vector<1x32x32xf32>
    "tpu.trace_stop"() : () -> ()
    %29 = vector.shape_cast %28 : vector<1x32x32xf32> to vector<1x4x8x32xf32>
    %c0_14 = arith.constant 0 : index
    %c0_15 = arith.constant 0 : index
    %c0_16 = arith.constant 0 : index
    %30 = vector.load %arg5[%c0_14, %c0_15, %c0_16] : memref<1x4x32xf32, #tpu.memory_space<vmem>>, vector<1x4x32xf32>
    %31 = vector.shape_cast %30 : vector<1x4x32xf32> to vector<4x32xf32>
    %32 = vector.shape_cast %31 : vector<4x32xf32> to vector<1x4x1x32xf32>
    %33 = vector.broadcast %32 : vector<1x4x1x32xf32> to vector<1x4x8x32xf32>
    %34 = arith.mulf %29, %33 : vector<1x4x8x32xf32>
    %cst_17 = arith.constant dense<0.000000e+00> : vector<1x8x32xf32>
    %35 = vector.multi_reduction <add>, %34, %cst_17 [1] : vector<1x4x8x32xf32> to vector<1x8x32xf32>
    %36 = vector.shape_cast %35 : vector<1x8x32xf32> to vector<8x32xf32>
    %c0_18 = arith.constant 0 : index
    %c0_19 = arith.constant 0 : index
    %37 = vector.load %arg9[%c0_18, %c0_19] : memref<8x32xf32, #tpu.memory_space<vmem>>, vector<8x32xf32>
    tpu.vector_store %arg9[%c0_18, %c0_19], %36 {strides = array<i32>} : memref<8x32xf32, #tpu.memory_space<vmem>>, vector<8x32xf32>,
    %c0_20 = arith.constant 0 : index
    %c0_21 = arith.constant 0 : index
    %38 = vector.load %arg9[%c0_20, %c0_21] : memref<8x32xf32, #tpu.memory_space<vmem>>, vector<8x32xf32>
    %c0_22 = arith.constant 0 : index
    %c0_23 = arith.constant 0 : index
    %39 = vector.load %arg6[%c0_22, %c0_23] : memref<32x128xf32, #tpu.memory_space<vmem>>, vector<32x128xf32>
    %cst_24 = arith.constant dense<0.000000e+00> : vector<8x128xf32>
    %40 = tpu.matmul %38, %39, %cst_24 {dimension_numbers = #tpu.dot_dimension_numbers<[1], [0], [0], [1], [0, 0, 1, 1], [], []>} : vector<8x32xf32>, vector<32x128xf32>, vector<8x128xf32> -> vector<8x128xf32>
    %c0_25 = arith.constant 0 : index
    %c0_26 = arith.constant 0 : index
    %41 = vector.load %arg7[%c0_25, %c0_26] : memref<1x128xf32, #tpu.memory_space<vmem>>, vector<1x128xf32>
    %42 = vector.broadcast %41 : vector<1x128xf32> to vector<8x128xf32>
    %43 = arith.addf %40, %42 : vector<8x128xf32>
    %c0_27 = arith.constant 0 : index
    %c0_28 = arith.constant 0 : index
    %44 = vector.load %arg8[%c0_27, %c0_28] : memref<8x128xf32, #tpu.memory_space<vmem>>, vector<8x128xf32>
    tpu.vector_store %arg8[%c0_27, %c0_28], %43 {strides = array<i32>} : memref<8x128xf32, #tpu.memory_space<vmem>>, vector<8x128xf32>,
    return
  }
  func.func @transform_0(%arg0: i32) -> (i32, i32, i32) {
    %c0_i32 = arith.constant 0 : i32
    %c0_i32_0 = arith.constant 0 : i32
    %c0_i32_1 = arith.constant 0 : i32
    return %arg0, %c0_i32, %c0_i32_0 : i32, i32, i32
  }
  func.func @transform_1(%arg0: i32) -> (i32, i32) {
    %c0_i32 = arith.constant 0 : i32
    %c0_i32_0 = arith.constant 0 : i32
    %c0_i32_1 = arith.constant 0 : i32
    return %c0_i32, %c0_i32_0 : i32, i32
  }
  func.func @transform_2(%arg0: i32) -> (i32, i32) {
    %c0_i32 = arith.constant 0 : i32
    %c0_i32_0 = arith.constant 0 : i32
    %c0_i32_1 = arith.constant 0 : i32
    return %c0_i32, %c0_i32_0 : i32, i32
  }
  func.func @transform_3(%arg0: i32) -> (i32, i32, i32) {
    %c0_i32 = arith.constant 0 : i32
    %c0_i32_0 = arith.constant 0 : i32
    %c0_i32_1 = arith.constant 0 : i32
    %c0_i32_2 = arith.constant 0 : i32
    return %c0_i32, %c0_i32_0, %c0_i32_1 : i32, i32, i32
  }
  func.func @transform_4(%arg0: i32) -> (i32, i32, i32) {
    %c0_i32 = arith.constant 0 : i32
    %c0_i32_0 = arith.constant 0 : i32
    %c0_i32_1 = arith.constant 0 : i32
    %c0_i32_2 = arith.constant 0 : i32
    return %c0_i32, %c0_i32_0, %c0_i32_1 : i32, i32, i32
  }
  func.func @transform_5(%arg0: i32) -> (i32, i32) {
    %c0_i32 = arith.constant 0 : i32
    %c0_i32_0 = arith.constant 0 : i32
    %c0_i32_1 = arith.constant 0 : i32
    return %c0_i32, %c0_i32_0 : i32, i32
  }
  func.func @transform_6(%arg0: i32) -> (i32, i32) {
    %c0_i32 = arith.constant 0 : i32
    %c0_i32_0 = arith.constant 0 : i32
    %c0_i32_1 = arith.constant 0 : i32
    return %c0_i32, %c0_i32_0 : i32, i32
  }
  func.func @transform_7(%arg0: i32) -> (i32, i32) {
    %c0_i32 = arith.constant 0 : i32
    %c0_i32_0 = arith.constant 0 : i32
    return %arg0, %c0_i32 : i32, i32
  }
}

</mosaic_0001>

<bundles_post_ra>
// kernel: tpu_custom_call.1
= control target key start
LH: loop header
LB: loop body
LE: loop exit
PB: predicated region body
PF: predicated region fallthrough
CT: control target
= control target key end

     0   :  { %s1590_s0 = inlined_call_operand.hbm [shape: f32[2,16,32], index: 0, kind: input, shape index: {}]   ;;  %s1591_s1 = inlined_call_operand.hbm [shape: f32[32,64], index: 1, kind: input, shape index: {}]   ;;  %s1592_s2 = inlined_call_operand.vmem [shape: f32[1,64], index: 2, kind: input, shape index: {}]   ;;  %s1593_s3 = inlined_call_operand.hbm [shape: f32[1,32,32], index: 3, kind: input, shape index: {}]   ;;  %s1594_s4 = inlined_call_operand.vmem [shape: f32[1,4,32], index: 4, kind: input, shape index: {}]   ;;  %s1595_s5 = inlined_call_operand.hbm [shape: f32[32,128], index: 5, kind: input, shape index: {}]   ;;  %s1596_s6 = inlined_call_operand.vmem [shape: f32[1,128], index: 6, kind: input, shape index: {}]   ;;  %s1597_s7 = inlined_call_operand.hbm [shape: f32[16,128], index: 7, kind: output, shape index: {}]  }
   0x1   :  { %1604 = sst [smem:[#allocation16_spill]] %s1591_s1 }
   0x2   :  { %12 = vsyncpa [#allocation4], 0 }
   0x3   :  { %14 = vsyncpa [#allocation4 + $0x1], 0 }
   0x4   :  { %15 = vsyncpa [#allocation7], 0 }
   0x5   :  { %16 = vsyncpa [#allocation10], 0 }
   0x6   :  { %17 = vsyncpa [#allocation5], 0 }
   0x7   :  { %19 = vsyncpa [#allocation5 + $0x1], 0  ;;  %s1362_s24 = smov 0   ;;  %s1364_s25 = smov 0  }
   0x8   :  { %s1366_s26 = smov 0   ;;  %s1368_s27 = smov 0  }
   0x9 LB: > { %s1383_s28 = sadd.s32 4294967295, %s1309_s27   ;;  %s944_s29 = sadd.s32 4294967294, %s1309_s27   ;;  %s1309_s27 = sphi %s1368_s27, %s1626_s27   ;;  %s1305_s26 = sphi %s1366_s26, %s1625_s26   ;;  %s1301_s25 = sphi %s1364_s25, %s1624_s25   ;;  %s1297_s24 = sphi %s1362_s24, %s1623_s24  }
   0xa   : > { %p45_p0 = scmp.ne.s32.totalorder %s1301_s25, %s1297_s24  ;;  %p1598_p1 = scmp.eq.s32.totalorder %s1383_s28, 0 }
   0xb   : > { %p195_p2 = scmp.eq.s32.totalorder %s1383_s28, 1  ;;  %p201_p3 = scmp.eq.s32.totalorder %s944_s29, 1 }
   0xc   : > { %p1392_p4 = por %p1598_p1, %p45_p0  ;;  %p945_p5 = scmp.ge.s32.totalorder %s1309_s27, 1 }
   0xd   : > { %p1397_p6 = por %p201_p3, %p45_p0  ;;  %p208_p7 = scmp.lt.s32.totalorder %s1309_s27, 3 }
   0xe   : > { %s1605_s30 = scalar_select %p1392_p4, 1, 0 }
   0xf   : > { %s1606_s8 = scalar_select %p1397_p6, 1, 0 }
  0x10   : > { %p1402_p8 = pnand %p945_p5, %p208_p7  ;;  %s1311_s10 = smov [#allocation6]  }
  0x11   : > { %s220_s11 = sshll.u32 %s1311_s10, 4  ;;  %s1312_s13 = smov [#allocation8]   ;;  %s221_s11 = int_to_ptr.vmem [resolvable:$true] %s220_s11 }
  0x12   : > { %s1607_s9 = scalar_select %p1402_p8, 1, 0 }
  0x13   : > { %p1058_p9 = pneg %p1402_p8  ;;  %s236_s14 = sshll.u32 %s1312_s13, 4  ;;  %s237_s14 = int_to_ptr.vmem [resolvable:$true] %s236_s14 }
  0x14   : > { %s1313_s15 = smov [#allocation9]   ;;  %s1142_s17 = scalar_lea.vmem %s221_s11, 512 }
  0x15   : > { %p1411_p11 = pnand %p1058_p9, %p1598_p1  ;;  %s252_s16 = sshll.u32 %s1313_s15, 4  ;;  %s253_s16 = int_to_ptr.vmem [resolvable:$true] %s252_s16 }
  0x16   : > { %p1143_p13 = scmp.ne.s32.totalorder %s221_s11, %s1142_s17  ;;  %p1150_p5 = scmp.lt.s32.totalorder %s221_s11, %s221_s11 }
  0x17   : > { %p1133_p12 = pneg %p1411_p11  ;;  %p1151_p7 = scmp.lt.s32.totalorder %s1142_s17, %s1142_s17 }
  0x19   : > { %p1145_p0 = pnand %p1143_p13, %p1133_p12  ;;  %p1152_p9 = por %p1151_p7, %p1150_p5 }
  0x1b   : > { %p1146_p3 = pneg %p1145_p0 }
  0x1d   : > { %p1153_p10 = pnand %p1152_p9, %p1146_p3 }
  0x1f   : > { %1156 = shalt.err (!%p1153_p10)
}
  0x20   : > { %s1599_s18 = smov 128   ;;  %s1600_s19 = smov 8  }
  0x21   : > { %s1609_s1 = sld [smem:[#allocation16_spill]]  ;;  %s1168_s22 = scalar_lea.vmem %s237_s14, 512 }
  0x22   : > { %p1169_p13 = scmp.ne.s32.totalorder %s237_s14, %s1168_s22  ;;  %p1176_p3 = scmp.lt.s32.totalorder %s237_s14, %s237_s14 }
  0x23   : > { %p1177_p10 = scmp.lt.s32.totalorder %s1168_s22, %s1168_s22 }
  0x24   : > { %p1171_p0 = pnand %p1169_p13, %p1133_p12 }
  0x25   : > { %p1178_p7 = por %p1177_p10, %p1176_p3 }
  0x26   : > { %p1172_p5 = pneg %p1171_p0 }
  0x27   : > { %1061 = dma.hbm_to_vmem [thread:$0]  (!%p1411_p11), %s1609_s1, 512, %s221_s11, [#allocation7], %s1599_s18, %s1599_s18, %s1600_s19  }
  0x28   : > { %p1179_p9 = pnand %p1178_p7, %p1172_p5 }
  0x2a   : > { %1182 = shalt.err (!%p1179_p9)
}
  0x2b   : > { %1064 = dma.hbm_to_vmem [thread:$0]  (!%p1411_p11), %s1593_s3, 512, %s237_s14, [#allocation7], %s1599_s18, %s1599_s18, %s1600_s19  }
  0x2c   : > { %s1194_s10 = scalar_lea.vmem %s253_s16, 512  ;;  %p1202_p3 = scmp.lt.s32.totalorder %s253_s16, %s253_s16 }
  0x2d   : > { %p1195_p1 = scmp.ne.s32.totalorder %s253_s16, %s1194_s10  ;;  %p1203_p5 = scmp.lt.s32.totalorder %s1194_s10, %s1194_s10 }
  0x2f   : > { %p1197_p13 = pnand %p1195_p1, %p1133_p12  ;;  %p1204_p10 = por %p1203_p5, %p1202_p3 }
  0x31   : > { %p1198_p0 = pneg %p1197_p13 }
  0x33   : > { %p1205_p7 = pnand %p1204_p10, %p1198_p0 }
  0x35   : > { %1208 = shalt.err (!%p1205_p7)
}
  0x36   : > { %1067 = dma.hbm_to_vmem [thread:$0]  (!%p1411_p11), %s1595_s5, 512, %s253_s16, [#allocation10], %s1599_s18, %s1599_s18, %s1600_s19  }
  0x37   : > { %s1451_s14 = sadd.s32 1, %s1309_s27   ;;  %s32_s15 = sadd.s32 1, %s1305_s26 }
  0x38   : > { %s29_s12 = ssub.s32 %s1309_s27, %s1451_s14  ;;  %p39_p12 = scmp.ne.s32.totalorder %s1305_s26, %s1301_s25 }
  0x39   : > { %p30_p1 = scmp.eq.s32.totalorder %s29_s12, 0  ;;  %p40_p9 = scmp.eq.s32.totalorder %s1309_s27, 0 }
  0x3a   : > { %p1079_p13 = scmp.lt.s32.totalorder %s1309_s27, 2  ;;  %p1465_p3 = por %p195_p2, %p39_p12 }
  0x3b   : > { %s1461_s17 = scalar_select %p30_p1, %s1305_s26, %s32_s15  }
  0x3c   : > { %p41_p0 = por %p40_p9, %p39_p12  ;;  %s269_s21 = sand.u32 1, %s1305_s26  }
  0x3d   : > { %s1610_s20 = scalar_select %p1465_p3, 1, 0 }
  0x3e   : > { %s975_s22 = sshll.u32 %s1309_s27, 8  ;;  %s950_s16 = sshll.u32 %s269_s21, 4 }
  0x3f   : > { %s1474_s10 = scalar_lea.hbm %s1590_s0, %s975_s22  ;;  %s273_s11 = scalar_lea.vmem [#allocation3], %s950_s16 }
  0x40   : > { %s280_s13 = sshll.u32 %s273_s11, 4  ;;  %p1476_p11 = pnand %p1079_p13, %p41_p0  ;;  %s1480_s13 = int_to_ptr.vmem [resolvable:$true] %s280_s13 }
  0x41   : > { %s1482_s15 = scalar_lea.sflag [#allocation4], %s269_s21  ;;  %s1209_s18 = scalar_lea.hbm %s1474_s10, 256 }
  0x42   : > { %p1210_p2 = scmp.ne.s32.totalorder %s1474_s10, %s1209_s18  ;;  %p1211_p5 = pneg %p1476_p11 }
  0x43   : > { %s1214_s16 = scalar_lea.hbm %s1590_s0, 512  ;;  %p1215_p1 = scmp.lt.s32.totalorder %s1474_s10, %s1590_s0 }
  0x44   : > { %p1212_p10 = pnand %p1211_p5, %p1210_p2  ;;  %p1216_p12 = scmp.lt.s32.totalorder %s1214_s16, %s1209_s18 }
  0x46   : > { %p1213_p7 = pneg %p1212_p10  ;;  %p1217_p9 = por %p1216_p12, %p1215_p1 }
  0x48   : > { %p1218_p13 = pnand %p1217_p9, %p1213_p7 }
  0x4a   : > { %1221 = shalt.err (!%p1218_p13)
}
  0x4b   : > { %s1222_s21 = scalar_lea.vmem %s1480_s13, 256  ;;  %s1316_s19 = smov [#allocation3]  }
  0x4c   : > { %p1223_p0 = scmp.ne.s32.totalorder %s1480_s13, %s1222_s21  ;;  %s1227_s1 = sshll.u32 %s1316_s19, 4  ;;  %s1228_s1 = int_to_ptr.vmem [resolvable:$false] %s1227_s1 }
  0x4d   : > { %s1229_s22 = scalar_lea.vmem %s1228_s1, 512  ;;  %p1230_p10 = scmp.lt.s32.totalorder %s1480_s13, %s1228_s1 }
  0x4e   : > { %p1225_p6 = pnand %p1223_p0, %p1211_p5  ;;  %p1231_p3 = scmp.lt.s32.totalorder %s1229_s22, %s1222_s21 }
  0x50   : > { %p1226_p2 = pneg %p1225_p6  ;;  %p1232_p4 = por %p1231_p3, %p1230_p10 }
  0x52   : > { %p1233_p8 = pnand %p1232_p4, %p1226_p2 }
  0x54   : > { %1236 = shalt.err (!%p1233_p8)
}
  0x55   : > { %s1612_s18 = smov 8   ;;  %s1613_s23 = smov 128  }
  0x56   : > { %1071 = dma.hbm_to_vmem [thread:$0]  (!%p1476_p11), %s1474_s10, 256, %s1480_s13, %s1482_s15, %s1613_s23, %s1613_s23, %s1612_s18  }
  0x57   : > { %p1614_p6 = scmp.ne.s32.totalorder %s1607_s9, 0 }
  0x58   : > { %s1509_s19 = sand.u32 (!%p1614_p6), 1, %s1301_s25   ;;  %p1615_p4 = scmp.ne.s32.totalorder (!%p1614_p6), %s1605_s30, 0 }
  0x59   : > { %292 = sbr.rel (%p1614_p6) target bundleno = 1130 (0x46a), region = 48  ;;  %s954_s1 = sshll.u32 (!%p1614_p6), %s1509_s19, 4 }
  0x5a   : > { %s295_s16 = scalar_lea.sflag (!%p1614_p6), [#allocation4], %s1509_s19  ;;  %s298_s29 = scalar_lea.vmem (!%p1614_p6), [#allocation3], %s954_s1 }
  0x5e   : > { %1280 = dma.done.wait (%p1615_p4), %s295_s16, 256  }
  0x5f   : > { %1282 = vsyncadd (%p1615_p4), %s295_s16, 4294967040  ;;  %p1616_p8 = scmp.eq.s32.totalorder %s1383_s28, 0 }
  0x61   : > { %1284 = dma.done.wait (%p1616_p8), [#allocation7], 1024   ;;  %p1617_p3 = pmov %p1616_p8 }
  0x63   : > { %1286 = vsyncadd (%p1617_p3), [#allocation7], 4294966272  ;;  %p1618_p11 = pmov %p1617_p3 }
  0x64   : > { %p1619_p5 = pmov %p1617_p3 }
  0x65   : > { %1288 = dma.done.wait (%p1618_p11), [#allocation10], 512  }
  0x66   : > { %1290 = vsyncadd (%p1619_p5), [#allocation10], 4294966784  ;;  %vm354_vm0 = vcmask 261120   ;;  %v346_v0 = vld [vmem:[#allocation6 + $0x18] sm:$0xff]  ;;  %v345_v1 = vld [vmem:[#allocation6 + $0x10] sm:$0xff]  ;;  %s1317_s10 = smov 96   ;;  %v700_v60 = vlaneseq }
  0x67   : > { %999 = vmatprep.subr.mxu0 %v346_v0  ;;  %v341_v2 = vld [vmem:[%s298_s29] sm:$0xff]  ;;  %v344_v3 = vld [vmem:[#allocation6 + $0x8] sm:$0xff]  ;;  %v439_v4 = vld [vmem:[#allocation8 + $0x18] sm:$0xff]  ;;  %vm589_vm1 = vcmask 130048   ;;  %v1318_v53 = vmov 0.0   ;;  %vm1319_vm2 = vmmov 0  }
  0x68   : > { %1000 = vmatpush3.msra.mxu0 %v346_v0  ;;  %1007 = vmatprep.mubr.msk.f32.mxu0 %vm354_vm0, %v341_v2  ;;  %v343_v5 = vld [vmem:[#allocation6] sm:$0xff]  ;;  %v342_v6 = vld [vmem:[%s298_s29 + $0x8] sm:$0xff]  ;;  %v438_v7 = vld [vmem:[#allocation8 + $0x10] sm:$0xff]  ;;  %v1320_v58 = vmov 1966171168   ;;  %v701_v62 = vshrl.u32 %v700_v60, 7 }
  0x69   : > { %1001 = vmatprep.subr.mxu0 %v345_v1  ;;  %1010 = vmatprep.subr.mxu1 %v439_v4  ;;  %v437_v8 = vld [vmem:[#allocation8 + $0x8] sm:$0xff]  ;;  %v436_v9 = vld [vmem:[#allocation8] sm:$0xff]  ;;  %v959_v10 = vld [vmem:[%s1592_s2] ss:$0 sm:$0xff]  ;;  %v698_v59 = vunpack.c.l.s4 %v1320_v58  ;;  %s958_s15 = sshll.u32 %s1509_s19, 3  ;;  %s972_s22 = sshll.u32 %s1383_s28, 7 }
  0x6a   : > { %1002 = vmatpush3.msra.mxu0 %v345_v1  ;;  %1011 = vmatpush3.msra.mxu1 %v439_v4  ;;  %v749_v54 = vld [vmem:[#allocation9 + $0x18] sm:$0xff]  ;;  %v748_v55 = vld [vmem:[#allocation9 + $0x10] sm:$0xff]  ;;  %v747_v56 = vld [vmem:[#allocation9 + $0x8] sm:$0xff]  ;;  %v715_v4 = vsub.s32 0, %v701_v62  ;;  %s340_s18 = scalar_lea.vmem [#allocation11], %s958_s15  ;;  %s1553_s29 = scalar_lea.hbm %s1597_s7, %s972_s22 }
  0x6b   : > { %1003 = vmatprep.subr.mxu0 %v344_v3  ;;  %1012 = vmatprep.subr.mxu1 %v438_v7  ;;  %v746_v57 = vld [vmem:[#allocation9] sm:$0xff]  ;;  %v699_v61 = vunpack.c.0.s8 %v698_v59  ;;  %v968_v63 = vld.sshfl [vmem:[%s1594_s4] sm:$0x33 pattern:$0x75316420]  ;;  %s845_s23 = sshll.u32 %s340_s18, 4  ;;  %s846_s23 = int_to_ptr.vmem [resolvable:$true] %s845_s23 }
  0x6c   : > { %1004 = vmatpush3.msra.mxu0 %v344_v3  ;;  %1013 = vmatpush3.msra.mxu1 %v438_v7  ;;  %v696_v0 = vcombine.high %v968_v63, %v968_v63  ;;  %s832_s30 = scalar_lea.sflag [#allocation5], %s1509_s19  ;;  %s1237_s9 = scalar_lea.vmem %s846_s23, 128 }
  0x6d   : > { %1005 = vmatprep.subr.mxu0 %v343_v5  ;;  %1014 = vmatprep.subr.mxu1 %v437_v8  ;;  %v702_v1 = vsub.s32 %v699_v61, %v701_v62  ;;  %p1238_p7 = scmp.ne.s32.totalorder %s846_s23, %s1237_s9  ;;  %p1620_p1 = scmp.ne.s32.totalorder %s1610_s20, 0 }
  0x6e   : > { %1006 = vmatpush3.msra.mxu0 %v343_v5  ;;  %1015 = vmatpush3.msra.mxu1 %v437_v8 }
  0x6f   : > { %1008 = vmatmul.mubr.msk.f32.vlgmr.msra.gmra.mxu0 %vm354_vm0, %v342_v6  ;;  %1016 = vmatprep.subr.mxu1 %v436_v9  ;;  %v703_v2 = vrot.slane %v968_v63, %v702_v1  ;;  %v710_v3 = vrot.slane %v696_v0, %v702_v1  ;;  %p1239_p12 = pnand %p1238_p7, %p1620_p1 }
  0x70   : > { %1017 = vmatpush3.msra.mxu1 %v436_v9 }
  0x71   : > { %1031 = vmatprep.subr.mxu1 %v1318_v53  ;;  %v716_v6 = vrot.slane %v703_v2, %v715_v4  ;;  %v720_v8 = vrot.slane %v710_v3, %v715_v4  ;;  %v712_v9 = vcombine.high %v710_v3, %v710_v3  ;;  %p1240_p9 = pneg %p1239_p12 }
 0x12f   : > { %v1009_v11 = vpop.f32.mrf.mxu0 }
 0x130   : > { %v433_v12 = vadd.f32 %v1009_v11, %v959_v10 }
 0x131   : > { %v427_v13 = vpop.f32.mrf.mxu0 }
 0x132   : > { %v428_v14 = vadd.f32 %v959_v10, %v427_v13  ;;  %585 = vrot.lane.b32.xlu0 %v433_v12, %s1317_s10  ;;  %v711_v10 = vcombine.high %v703_v2, %v703_v2  ;;  %v728_v13 = vrot.slane %v712_v9, %v715_v4 }
 0x134   : > { %1018 = vmatprep.mubr.msk.f32.mxu1 %vm354_vm0, %v428_v14 }
 0x135   : > { %1019 = vmatmul.mubr.msk.f32.vlgmr.msra.gmra.mxu1 %vm354_vm0, %v433_v12 }
 0x136   : > { %583 = vrot.lane.b32.xlu0 %v428_v14, %s1317_s10  ;;  %1032 = vmatpush3.msra.mxu1 %v749_v54  ;;  %v724_v14 = vrot.slane %v711_v10, %v715_v4  ;;  %s1321_s10 = smov [#allocation11]  }
 0x137   : > { %1039 = vmatprep.mubr.msk.f32.mxu1 %vm1319_vm2, %v1318_v53  ;;  %1033 = vmatprep.subr.mxu1 %v1318_v53  ;;  %s1241_s28 = sshll.u32 %s1321_s10, 4  ;;  %s1242_s28 = int_to_ptr.vmem [resolvable:$false] %s1241_s28 }
 0x138   : > { %1034 = vmatpush3.msra.mxu1 %v748_v55  ;;  %s1243_s13 = scalar_lea.vmem %s1242_s28, 256  ;;  %p1244_p13 = scmp.lt.s32.totalorder %s846_s23, %s1242_s28 }
 0x139   : > { %1035 = vmatprep.subr.mxu1 %v1318_v53  ;;  %p1245_p0 = scmp.lt.s32.totalorder %s1243_s13, %s1237_s9 }
 0x13a   : > { %1036 = vmatpush3.msra.mxu1 %v747_v56 }
 0x13b   : > { %1037 = vmatprep.subr.mxu1 %v1318_v53  ;;  %p1246_p2 = por %p1245_p0, %p1244_p13 }
 0x13c   : > { %1038 = vmatpush3.msra.mxu1 %v746_v57 }
 0x13d   : > { %p1247_p10 = pnand %p1246_p2, %p1240_p9 }
 0x1a4   : > { %v586_v15 = vpop.permute.xlu0 %585 }
 0x1a5   : > { %1021 = vmatprep.subr.mxu0 %v586_v15 }
 0x1a6   : > { %1022 = vmatpush3.msra.mxu0 %v586_v15 }
 0x1a8   : > { %v584_v16 = vpop.permute.xlu0 %583 }
 0x1a9   : > { %1023 = vmatprep.subr.mxu0 %v584_v16 }
 0x1aa   : > { %1024 = vmatpush3.msra.mxu0 %v584_v16 }
 0x1f5   : > { %v1020_v17 = vpop.f32.mrf.mxu1 }
 0x1f6   : > { %v522_v19 = vsel %vm354_vm0, %v1020_v17, -inf }
 0x1f7   : > { %v512_v18 = vpop.f32.mrf.mxu1 }
 0x1f8   : > { %v521_v20 = vsel %vm354_vm0, %v512_v18, -inf }
 0x1f9   : > { %v523_v21 = vmax.f32 %v521_v20, %v522_v19 }
 0x1fb   : > { %v524_v22 = vrot.slane %v523_v21, 4 }
 0x1fd   : > { %v525_v23 = vmax.f32 %v523_v21, %v524_v22 }
 0x1ff   : > { %v526_v24 = vrot.slane %v525_v23, 2 }
 0x201   : > { %v527_v25 = vmax.f32 %v525_v23, %v526_v24 }
 0x203   : > { %v528_v26 = vrot.slane %v527_v25, 1 }
 0x205   : > { %v529_v27 = vmax.f32 %v527_v25, %v528_v26 }
 0x207   : > { %v530_v28 = vsub.f32 %v512_v18, %v529_v27  ;;  %v531_v29 = vsub.f32 %v1020_v17, %v529_v27  ;;  %v969_v27 = vld [vmem:[%s1596_s6] ss:$0 sm:$0xff] }
 0x209   : > { %v532_v30 = vmul.f32 1.442695, %v530_v28  ;;  %v534_v31 = vmul.f32 1.442695, %v531_v29 }
 0x20b   : > { %1125 = vpow2.f32 %v532_v30 }
 0x20c   : > { %1127 = vpow2.f32 %v534_v31 }
 0x218   : > { %v1126_v32 = vpop.eup %1125 }
 0x219   : > { %v1128_v33 = vpop.eup %1127  ;;  %v536_v34 = vsel %vm354_vm0, %v1126_v32, 0.0 }
 0x21a   : > { %v537_v35 = vsel %vm354_vm0, %v1128_v33, 0.0 }
 0x21b   : > { %v538_v36 = vadd.f32 %v537_v35, %v536_v34 }
 0x21d   : > { %v539_v37 = vrot.slane %v538_v36, 4 }
 0x21f   : > { %v540_v38 = vadd.f32 %v539_v37, %v538_v36 }
 0x221   : > { %v541_v39 = vrot.slane %v540_v38, 2 }
 0x223   : > { %v542_v40 = vadd.f32 %v541_v39, %v540_v38 }
 0x225   : > { %v543_v41 = vrot.slane %v542_v40, 1 }
 0x227   : > { %v544_v42 = vadd.f32 %v543_v41, %v542_v40 }
 0x229   : > { %1129 = vrcp.f32 %v544_v42 }
 0x236   : > { %v1130_v43 = vpop.eup %1129 }
 0x237   : > { %v546_v44 = vmul.f32 %v1130_v43, %v544_v42 }
 0x239   : > { %v547_v45 = vsub.f32 2.0, %v546_v44 }
 0x23b   : > { %v548_v46 = vmul.f32 %v1130_v43, %v547_v45 }
 0x23d   : > { %v549_v47 = vmul.f32 %v1126_v32, %v548_v46  ;;  %v550_v48 = vmul.f32 %v1128_v33, %v548_v46 }
 0x23f   : > { %551 = vxpose.xlu1.b32.start [1/2] (short) (narrow) %v549_v47, 32 }
 0x243   : > { %552 = vxpose.xlu1.b32.end [2/2] (short) (narrow) %v550_v48, 32 }
 0x2bb   : > { %v567_v49 = vpop.trf.xlu1 }
 0x2bc   : > { %1025 = vmatprep.mubr.msk.f32.mxu0 %vm589_vm1, %v567_v49 }
 0x2bf   : > { %v568_v50 = vpop.trf.xlu1 }
 0x2c0   : > { %1026 = vmatmul.mubr.msk.f32.vlgmr.msra.gmra.mxu0 %vm589_vm1, %v568_v50 }
 0x2c3   : > { %v569_v51 = vpop.trf.xlu1 }
 0x2c4   : > { %1028 = vmatprep.mubr.msk.f32.mxu0 %vm589_vm1, %v569_v51 }
 0x2c7   : > { %v570_v52 = vpop.trf.xlu1 }
 0x2c8   : > { %1029 = vmatmul.mubr.msk.f32.gmra.mxu0 %vm589_vm1, %v570_v52 }
 0x380   : > { %v1027_v5 = vpop.f32.mrf.mxu0 }
 0x381   : > { %v734_v12 = vmul.f32 %v1027_v5, %v720_v8 }
 0x382   : > { %v668_v7 = vpop.f32.mrf.mxu0 }
 0x383   : > { %v733_v11 = vmul.f32 %v716_v6, %v668_v7  ;;  %v738_v18 = vsel %vm354_vm0, %v734_v12, 0.0 }
 0x385   : > { %v737_v16 = vsel %vm354_vm0, %v733_v11, 0.0 }
 0x386   : > { %v739_v21 = vadd.f32 %v738_v18, %v737_v16 }
 0x388   : > { %v1030_v15 = vpop.f32.mrf.mxu0 }
 0x389   : > { %v736_v19 = vmul.f32 %v1030_v15, %v728_v13 }
 0x38a   : > { %v678_v17 = vpop.f32.mrf.mxu0 }
 0x38b   : > { %v735_v20 = vmul.f32 %v724_v14, %v678_v17  ;;  %v742_v24 = vsel %vm354_vm0, %v736_v19, 0.0 }
 0x38d   : > { %v740_v22 = vsel %vm354_vm0, %v735_v20, 0.0 }
 0x38e   : > { %v741_v23 = vadd.f32 %v740_v22, %v739_v21 }
 0x390   : > { %v743_v25 = vadd.f32 %v742_v24, %v741_v23 }
 0x392   : > { %744 = vst.msk [vmem:[#allocation2] sm:$0xff] %vm354_vm0, %v743_v25 }
 0x399   : > { %v745_v26 = vld [vmem:[#allocation2] sm:$0xff] }
 0x39a   : > { %1040 = vmatmul.mubr.msk.f32.vlgmr.msra.gmra.mxu1 %vm354_vm0, %v745_v26 }
 0x45a   : > { %v826_v28 = vpop.f32.mrf.mxu1 }
 0x45b   : > { %v827_v29 = vadd.f32 %v969_v27, %v826_v28 }
 0x45c   : > { %v1041_v30 = vpop.f32.mrf.mxu1 }
 0x45d   : > { %830 = vst [vmem:[%s340_s18] sm:$0xff] %v827_v29 }
 0x45e   : > { %1250 = shalt.err (!%p1247_p10)
}
 0x45f   : > { %s1251_s12 = scalar_lea.hbm %s1553_s29, 128  ;;  %s1255_s11 = scalar_lea.hbm %s1597_s7, 256 }
 0x460   : > { %p1252_p6 = scmp.ne.s32.totalorder %s1553_s29, %s1251_s12  ;;  %p1256_p3 = scmp.lt.s32.totalorder %s1553_s29, %s1597_s7 }
 0x461   : > { %p1257_p11 = scmp.lt.s32.totalorder %s1255_s11, %s1251_s12 }
 0x462   : > { %p1253_p4 = pnand %p1252_p6, %p1620_p1 }
 0x463   : > { %p1258_p5 = por %p1257_p11, %p1256_p3 }
 0x464   : > { %p1254_p8 = pneg %p1253_p4 }
 0x466   : > { %p1259_p7 = pnand %p1258_p5, %p1254_p8 }
 0x468   : > { %1262 = shalt.err (!%p1259_p7)
}
 0x469   : > { %1056 = dma.vmem_to_hbm [thread:$0]  (%p1620_p1), %s846_s23, 128, %s1553_s29, %s832_s30  }
 0x46a PF: > { %s857_s18 = sand.u32 1, %s1297_s24   ;;  %p1621_p12 = scmp.ne.s32.totalorder %s1606_s8, 0 }
 0x46b   : > { %p1622_p9 = scmp.ge.s32.totalorder %s1309_s27, 2  ;;  %s858_s1 = scalar_lea.sflag [#allocation5], %s857_s18 }
 0x46d   : > { %p1073_p13 = pnand %p1622_p9, %p1621_p12 }
 0x46f   : > { %p1074_p0 = pneg %p1073_p13 }
 0x471   : > { %1292 = dma.done.wait (%p1074_p0), %s858_s1, 128  }
 0x472   : > { %1294 = vsyncadd (%p1074_p0), %s858_s1, 4294967168  ;;  %p22_p2 = scmp.ge.s32.totalorder %s1451_s14, 4   ;;  %s1623_s24 = smov %s1301_s25 }
 0x473   : > { %s1624_s25 = smov %s1305_s26  ;;  %s1625_s26 = smov %s1461_s17 }
 0x474   : > { %s1626_s27 = smov %s1451_s14  ;;  %24 = sbr.rel (!%p22_p2) target bundleno = 9 (0x9), region = 105 }
 0x479   :  { %863 = vsyncpa [#allocation4], 1 }
 0x47a   :  { %865 = vsyncpa [#allocation4 + $0x1], 1 }
 0x47b   :  { %866 = vsyncpa [#allocation7], 1 }
 0x47c   :  { %867 = vsyncpa [#allocation10], 1 }
 0x47d   :  { %868 = vsyncpa [#allocation5], 1 }
 0x47e   :  { %870 = vsyncpa [#allocation5 + $0x1], 1 }

// kernel: tpu_custom_call.1
= control target key start
LH: loop header
LB: loop body
LE: loop exit
PB: predicated region body
PF: predicated region fallthrough
CT: control target
= control target key end

     0   :  { %s1590_s0 = inlined_call_operand.hbm [shape: f32[2,16,32], index: 0, kind: input, shape index: {}]   ;;  %s1591_s1 = inlined_call_operand.hbm [shape: f32[32,64], index: 1, kind: input, shape index: {}]   ;;  %s1592_s2 = inlined_call_operand.vmem [shape: f32[1,64], index: 2, kind: input, shape index: {}]   ;;  %s1593_s3 = inlined_call_operand.hbm [shape: f32[1,32,32], index: 3, kind: input, shape index: {}]   ;;  %s1594_s4 = inlined_call_operand.vmem [shape: f32[1,4,32], index: 4, kind: input, shape index: {}]   ;;  %s1595_s5 = inlined_call_operand.hbm [shape: f32[32,128], index: 5, kind: input, shape index: {}]   ;;  %s1596_s6 = inlined_call_operand.vmem [shape: f32[1,128], index: 6, kind: input, shape index: {}]   ;;  %s1597_s7 = inlined_call_operand.hbm [shape: f32[16,128], index: 7, kind: output, shape index: {}]  }
   0x1   :  { %1604 = sst [smem:[#allocation16_spill]] %s1591_s1 }
   0x2   :  { %12 = vsyncpa [#allocation4], 0 }
   0x3   :  { %14 = vsyncpa [#allocation4 + $0x1], 0 }
   0x4   :  { %15 = vsyncpa [#allocation7], 0 }
   0x5   :  { %16 = vsyncpa [#allocation10], 0 }
   0x6   :  { %17 = vsyncpa [#allocation5], 0 }
   0x7   :  { %19 = vsyncpa [#allocation5 + $0x1], 0  ;;  %s1362_s24 = smov 0   ;;  %s1364_s25 = smov 0  }
   0x8   :  { %s1366_s26 = smov 0   ;;  %s1368_s27 = smov 0  }
   0x9 LB: > { %s1383_s28 = sadd.s32 4294967295, %s1309_s27   ;;  %s944_s29 = sadd.s32 4294967294, %s1309_s27   ;;  %s1309_s27 = sphi %s1368_s27, %s1626_s27   ;;  %s1305_s26 = sphi %s1366_s26, %s1625_s26   ;;  %s1301_s25 = sphi %s1364_s25, %s1624_s25   ;;  %s1297_s24 = sphi %s1362_s24, %s1623_s24  }
   0xa   : > { %p45_p0 = scmp.ne.s32.totalorder %s1301_s25, %s1297_s24  ;;  %p1598_p1 = scmp.eq.s32.totalorder %s1383_s28, 0 }
   0xb   : > { %p195_p2 = scmp.eq.s32.totalorder %s1383_s28, 1  ;;  %p201_p3 = scmp.eq.s32.totalorder %s944_s29, 1 }
   0xc   : > { %p1392_p4 = por %p1598_p1, %p45_p0  ;;  %p945_p5 = scmp.ge.s32.totalorder %s1309_s27, 1 }
   0xd   : > { %p1397_p6 = por %p201_p3, %p45_p0  ;;  %p208_p7 = scmp.lt.s32.totalorder %s1309_s27, 3 }
   0xe   : > { %s1605_s30 = scalar_select %p1392_p4, 1, 0 }
   0xf   : > { %s1606_s8 = scalar_select %p1397_p6, 1, 0 }
  0x10   : > { %p1402_p8 = pnand %p945_p5, %p208_p7  ;;  %s1311_s10 = smov [#allocation6]  }
  0x11   : > { %s220_s11 = sshll.u32 %s1311_s10, 4  ;;  %s1312_s13 = smov [#allocation8]   ;;  %s221_s11 = int_to_ptr.vmem [resolvable:$true] %s220_s11 }
  0x12   : > { %s1607_s9 = scalar_select %p1402_p8, 1, 0 }
  0x13   : > { %p1058_p9 = pneg %p1402_p8  ;;  %s236_s14 = sshll.u32 %s1312_s13, 4  ;;  %s237_s14 = int_to_ptr.vmem [resolvable:$true] %s236_s14 }
  0x14   : > { %s1313_s15 = smov [#allocation9]   ;;  %s1142_s17 = scalar_lea.vmem %s221_s11, 512 }
  0x15   : > { %p1411_p11 = pnand %p1058_p9, %p1598_p1  ;;  %s252_s16 = sshll.u32 %s1313_s15, 4  ;;  %s253_s16 = int_to_ptr.vmem [resolvable:$true] %s252_s16 }
  0x16   : > { %p1143_p13 = scmp.ne.s32.totalorder %s221_s11, %s1142_s17  ;;  %p1150_p5 = scmp.lt.s32.totalorder %s221_s11, %s221_s11 }
  0x17   : > { %p1133_p12 = pneg %p1411_p11  ;;  %p1151_p7 = scmp.lt.s32.totalorder %s1142_s17, %s1142_s17 }
  0x19   : > { %p1145_p0 = pnand %p1143_p13, %p1133_p12  ;;  %p1152_p9 = por %p1151_p7, %p1150_p5 }
  0x1b   : > { %p1146_p3 = pneg %p1145_p0 }
  0x1d   : > { %p1153_p10 = pnand %p1152_p9, %p1146_p3 }
  0x1f   : > { %1156 = shalt.err (!%p1153_p10)
}
  0x20   : > { %s1599_s18 = smov 128   ;;  %s1600_s19 = smov 8  }
  0x21   : > { %s1609_s1 = sld [smem:[#allocation16_spill]]  ;;  %s1168_s22 = scalar_lea.vmem %s237_s14, 512 }
  0x22   : > { %p1169_p13 = scmp.ne.s32.totalorder %s237_s14, %s1168_s22  ;;  %p1176_p3 = scmp.lt.s32.totalorder %s237_s14, %s237_s14 }
  0x23   : > { %p1177_p10 = scmp.lt.s32.totalorder %s1168_s22, %s1168_s22 }
  0x24   : > { %p1171_p0 = pnand %p1169_p13, %p1133_p12 }
  0x25   : > { %p1178_p7 = por %p1177_p10, %p1176_p3 }
  0x26   : > { %p1172_p5 = pneg %p1171_p0 }
  0x27   : > { %1061 = dma.hbm_to_vmem [thread:$0]  (!%p1411_p11), %s1609_s1, 512, %s221_s11, [#allocation7], %s1599_s18, %s1599_s18, %s1600_s19  }
  0x28   : > { %p1179_p9 = pnand %p1178_p7, %p1172_p5 }
  0x2a   : > { %1182 = shalt.err (!%p1179_p9)
}
  0x2b   : > { %1064 = dma.hbm_to_vmem [thread:$0]  (!%p1411_p11), %s1593_s3, 512, %s237_s14, [#allocation7], %s1599_s18, %s1599_s18, %s1600_s19  }
  0x2c   : > { %s1194_s10 = scalar_lea.vmem %s253_s16, 512  ;;  %p1202_p3 = scmp.lt.s32.totalorder %s253_s16, %s253_s16 }
  0x2d   : > { %p1195_p1 = scmp.ne.s32.totalorder %s253_s16, %s1194_s10  ;;  %p1203_p5 = scmp.lt.s32.totalorder %s1194_s10, %s1194_s10 }
  0x2f   : > { %p1197_p13 = pnand %p1195_p1, %p1133_p12  ;;  %p1204_p10 = por %p1203_p5, %p1202_p3 }
  0x31   : > { %p1198_p0 = pneg %p1197_p13 }
  0x33   : > { %p1205_p7 = pnand %p1204_p10, %p1198_p0 }
  0x35   : > { %1208 = shalt.err (!%p1205_p7)
}
  0x36   : > { %1067 = dma.hbm_to_vmem [thread:$0]  (!%p1411_p11), %s1595_s5, 512, %s253_s16, [#allocation10], %s1599_s18, %s1599_s18, %s1600_s19  }
  0x37   : > { %s1451_s14 = sadd.s32 1, %s1309_s27   ;;  %s32_s15 = sadd.s32 1, %s1305_s26 }
  0x38   : > { %s29_s12 = ssub.s32 %s1309_s27, %s1451_s14  ;;  %p39_p12 = scmp.ne.s32.totalorder %s1305_s26, %s1301_s25 }
  0x39   : > { %p30_p1 = scmp.eq.s32.totalorder %s29_s12, 0  ;;  %p40_p9 = scmp.eq.s32.totalorder %s1309_s27, 0 }
  0x3a   : > { %p1079_p13 = scmp.lt.s32.totalorder %s1309_s27, 2  ;;  %p1465_p3 = por %p195_p2, %p39_p12 }
  0x3b   : > { %s1461_s17 = scalar_select %p30_p1, %s1305_s26, %s32_s15  }
  0x3c   : > { %p41_p0 = por %p40_p9, %p39_p12  ;;  %s269_s21 = sand.u32 1, %s1305_s26  }
  0x3d   : > { %s1610_s20 = scalar_select %p1465_p3, 1, 0 }
  0x3e   : > { %s975_s22 = sshll.u32 %s1309_s27, 8  ;;  %s950_s16 = sshll.u32 %s269_s21, 4 }
  0x3f   : > { %s1474_s10 = scalar_lea.hbm %s1590_s0, %s975_s22  ;;  %s273_s11 = scalar_lea.vmem [#allocation3], %s950_s16 }
  0x40   : > { %s280_s13 = sshll.u32 %s273_s11, 4  ;;  %p1476_p11 = pnand %p1079_p13, %p41_p0  ;;  %s1480_s13 = int_to_ptr.vmem [resolvable:$true] %s280_s13 }
  0x41   : > { %s1482_s15 = scalar_lea.sflag [#allocation4], %s269_s21  ;;  %s1209_s18 = scalar_lea.hbm %s1474_s10, 256 }
  0x42   : > { %p1210_p2 = scmp.ne.s32.totalorder %s1474_s10, %s1209_s18  ;;  %p1211_p5 = pneg %p1476_p11 }
  0x43   : > { %s1214_s16 = scalar_lea.hbm %s1590_s0, 512  ;;  %p1215_p1 = scmp.lt.s32.totalorder %s1474_s10, %s1590_s0 }
  0x44   : > { %p1212_p10 = pnand %p1211_p5, %p1210_p2  ;;  %p1216_p12 = scmp.lt.s32.totalorder %s1214_s16, %s1209_s18 }
  0x46   : > { %p1213_p7 = pneg %p1212_p10  ;;  %p1217_p9 = por %p1216_p12, %p1215_p1 }
  0x48   : > { %p1218_p13 = pnand %p1217_p9, %p1213_p7 }
  0x4a   : > { %1221 = shalt.err (!%p1218_p13)
}
  0x4b   : > { %s1222_s21 = scalar_lea.vmem %s1480_s13, 256  ;;  %s1316_s19 = smov [#allocation3]  }
  0x4c   : > { %p1223_p0 = scmp.ne.s32.totalorder %s1480_s13, %s1222_s21  ;;  %s1227_s1 = sshll.u32 %s1316_s19, 4  ;;  %s1228_s1 = int_to_ptr.vmem [resolvable:$false] %s1227_s1 }
  0x4d   : > { %s1229_s22 = scalar_lea.vmem %s1228_s1, 512  ;;  %p1230_p10 = scmp.lt.s32.totalorder %s1480_s13, %s1228_s1 }
  0x4e   : > { %p1225_p6 = pnand %p1223_p0, %p1211_p5  ;;  %p1231_p3 = scmp.lt.s32.totalorder %s1229_s22, %s1222_s21 }
  0x50   : > { %p1226_p2 = pneg %p1225_p6  ;;  %p1232_p4 = por %p1231_p3, %p1230_p10 }
  0x52   : > { %p1233_p8 = pnand %p1232_p4, %p1226_p2 }
  0x54   : > { %1236 = shalt.err (!%p1233_p8)
}
  0x55   : > { %s1612_s18 = smov 8   ;;  %s1613_s23 = smov 128  }
  0x56   : > { %1071 = dma.hbm_to_vmem [thread:$0]  (!%p1476_p11), %s1474_s10, 256, %s1480_s13, %s1482_s15, %s1613_s23, %s1613_s23, %s1612_s18  }
  0x57   : > { %p1614_p6 = scmp.ne.s32.totalorder %s1607_s9, 0 }
  0x58   : > { %s1509_s19 = sand.u32 (!%p1614_p6), 1, %s1301_s25   ;;  %p1615_p4 = scmp.ne.s32.totalorder (!%p1614_p6), %s1605_s30, 0 }
  0x59   : > { %292 = sbr.rel (%p1614_p6) target bundleno = 1130 (0x46a), region = 48  ;;  %s954_s1 = sshll.u32 (!%p1614_p6), %s1509_s19, 4 }
  0x5a   : > { %s295_s16 = scalar_lea.sflag (!%p1614_p6), [#allocation4], %s1509_s19  ;;  %s298_s29 = scalar_lea.vmem (!%p1614_p6), [#allocation3], %s954_s1 }
  0x5e   : > { %1280 = dma.done.wait (%p1615_p4), %s295_s16, 256  }
  0x5f   : > { %1282 = vsyncadd (%p1615_p4), %s295_s16, 4294967040  ;;  %p1616_p8 = scmp.eq.s32.totalorder %s1383_s28, 0 }
  0x61   : > { %1284 = dma.done.wait (%p1616_p8), [#allocation7], 1024   ;;  %p1617_p3 = pmov %p1616_p8 }
  0x63   : > { %1286 = vsyncadd (%p1617_p3), [#allocation7], 4294966272  ;;  %p1618_p11 = pmov %p1617_p3 }
  0x64   : > { %p1619_p5 = pmov %p1617_p3 }
  0x65   : > { %1288 = dma.done.wait (%p1618_p11), [#allocation10], 512  }
  0x66   : > { %1290 = vsyncadd (%p1619_p5), [#allocation10], 4294966784  ;;  %vm354_vm0 = vcmask 261120   ;;  %v346_v0 = vld [vmem:[#allocation6 + $0x18] sm:$0xff]  ;;  %v345_v1 = vld [vmem:[#allocation6 + $0x10] sm:$0xff]  ;;  %s1317_s10 = smov 96   ;;  %v700_v60 = vlaneseq }
  0x67   : > { %999 = vmatprep.subr.mxu0 %v346_v0  ;;  %v341_v2 = vld [vmem:[%s298_s29] sm:$0xff]  ;;  %v344_v3 = vld [vmem:[#allocation6 + $0x8] sm:$0xff]  ;;  %v439_v4 = vld [vmem:[#allocation8 + $0x18] sm:$0xff]  ;;  %vm589_vm1 = vcmask 130048   ;;  %v1318_v53 = vmov 0.0   ;;  %vm1319_vm2 = vmmov 0  }
  0x68   : > { %1000 = vmatpush3.msra.mxu0 %v346_v0  ;;  %1007 = vmatprep.mubr.msk.f32.mxu0 %vm354_vm0, %v341_v2  ;;  %v343_v5 = vld [vmem:[#allocation6] sm:$0xff]  ;;  %v342_v6 = vld [vmem:[%s298_s29 + $0x8] sm:$0xff]  ;;  %v438_v7 = vld [vmem:[#allocation8 + $0x10] sm:$0xff]  ;;  %v1320_v58 = vmov 1966171168   ;;  %v701_v62 = vshrl.u32 %v700_v60, 7 }
  0x69   : > { %1001 = vmatprep.subr.mxu0 %v345_v1  ;;  %1010 = vmatprep.subr.mxu1 %v439_v4  ;;  %v437_v8 = vld [vmem:[#allocation8 + $0x8] sm:$0xff]  ;;  %v436_v9 = vld [vmem:[#allocation8] sm:$0xff]  ;;  %v959_v10 = vld [vmem:[%s1592_s2] ss:$0 sm:$0xff]  ;;  %v698_v59 = vunpack.c.l.s4 %v1320_v58  ;;  %s958_s15 = sshll.u32 %s1509_s19, 3  ;;  %s972_s22 = sshll.u32 %s1383_s28, 7 }
  0x6a   : > { %1002 = vmatpush3.msra.mxu0 %v345_v1  ;;  %1011 = vmatpush3.msra.mxu1 %v439_v4  ;;  %v749_v54 = vld [vmem:[#allocation9 + $0x18] sm:$0xff]  ;;  %v748_v55 = vld [vmem:[#allocation9 + $0x10] sm:$0xff]  ;;  %v747_v56 = vld [vmem:[#allocation9 + $0x8] sm:$0xff]  ;;  %v715_v4 = vsub.s32 0, %v701_v62  ;;  %s340_s18 = scalar_lea.vmem [#allocation11], %s958_s15  ;;  %s1553_s29 = scalar_lea.hbm %s1597_s7, %s972_s22 }
  0x6b   : > { %1003 = vmatprep.subr.mxu0 %v344_v3  ;;  %1012 = vmatprep.subr.mxu1 %v438_v7  ;;  %v746_v57 = vld [vmem:[#allocation9] sm:$0xff]  ;;  %v699_v61 = vunpack.c.0.s8 %v698_v59  ;;  %v968_v63 = vld.sshfl [vmem:[%s1594_s4] sm:$0x33 pattern:$0x75316420]  ;;  %s845_s23 = sshll.u32 %s340_s18, 4  ;;  %s846_s23 = int_to_ptr.vmem [resolvable:$true] %s845_s23 }
  0x6c   : > { %1004 = vmatpush3.msra.mxu0 %v344_v3  ;;  %1013 = vmatpush3.msra.mxu1 %v438_v7  ;;  %v696_v0 = vcombine.high %v968_v63, %v968_v63  ;;  %s832_s30 = scalar_lea.sflag [#allocation5], %s1509_s19  ;;  %s1237_s9 = scalar_lea.vmem %s846_s23, 128 }
  0x6d   : > { %1005 = vmatprep.subr.mxu0 %v343_v5  ;;  %1014 = vmatprep.subr.mxu1 %v437_v8  ;;  %v702_v1 = vsub.s32 %v699_v61, %v701_v62  ;;  %p1238_p7 = scmp.ne.s32.totalorder %s846_s23, %s1237_s9  ;;  %p1620_p1 = scmp.ne.s32.totalorder %s1610_s20, 0 }
  0x6e   : > { %1006 = vmatpush3.msra.mxu0 %v343_v5  ;;  %1015 = vmatpush3.msra.mxu1 %v437_v8 }
  0x6f   : > { %1008 = vmatmul.mubr.msk.f32.vlgmr.msra.gmra.mxu0 %vm354_vm0, %v342_v6  ;;  %1016 = vmatprep.subr.mxu1 %v436_v9  ;;  %v703_v2 = vrot.slane %v968_v63, %v702_v1  ;;  %v710_v3 = vrot.slane %v696_v0, %v702_v1  ;;  %p1239_p12 = pnand %p1238_p7, %p1620_p1 }
  0x70   : > { %1017 = vmatpush3.msra.mxu1 %v436_v9 }
  0x71   : > { %1031 = vmatprep.subr.mxu1 %v1318_v53  ;;  %v716_v6 = vrot.slane %v703_v2, %v715_v4  ;;  %v720_v8 = vrot.slane %v710_v3, %v715_v4  ;;  %v712_v9 = vcombine.high %v710_v3, %v710_v3  ;;  %p1240_p9 = pneg %p1239_p12 }
 0x12f   : > { %v1009_v11 = vpop.f32.mrf.mxu0 }
 0x130   : > { %v433_v12 = vadd.f32 %v1009_v11, %v959_v10 }
 0x131   : > { %v427_v13 = vpop.f32.mrf.mxu0 }
 0x132   : > { %v428_v14 = vadd.f32 %v959_v10, %v427_v13  ;;  %585 = vrot.lane.b32.xlu0 %v433_v12, %s1317_s10  ;;  %v711_v10 = vcombine.high %v703_v2, %v703_v2  ;;  %v728_v13 = vrot.slane %v712_v9, %v715_v4 }
 0x134   : > { %1018 = vmatprep.mubr.msk.f32.mxu1 %vm354_vm0, %v428_v14 }
 0x135   : > { %1019 = vmatmul.mubr.msk.f32.vlgmr.msra.gmra.mxu1 %vm354_vm0, %v433_v12 }
 0x136   : > { %583 = vrot.lane.b32.xlu0 %v428_v14, %s1317_s10  ;;  %1032 = vmatpush3.msra.mxu1 %v749_v54  ;;  %v724_v14 = vrot.slane %v711_v10, %v715_v4  ;;  %s1321_s10 = smov [#allocation11]  }
 0x137   : > { %1039 = vmatprep.mubr.msk.f32.mxu1 %vm1319_vm2, %v1318_v53  ;;  %1033 = vmatprep.subr.mxu1 %v1318_v53  ;;  %s1241_s28 = sshll.u32 %s1321_s10, 4  ;;  %s1242_s28 = int_to_ptr.vmem [resolvable:$false] %s1241_s28 }
 0x138   : > { %1034 = vmatpush3.msra.mxu1 %v748_v55  ;;  %s1243_s13 = scalar_lea.vmem %s1242_s28, 256  ;;  %p1244_p13 = scmp.lt.s32.totalorder %s846_s23, %s1242_s28 }
 0x139   : > { %1035 = vmatprep.subr.mxu1 %v1318_v53  ;;  %p1245_p0 = scmp.lt.s32.totalorder %s1243_s13, %s1237_s9 }
 0x13a   : > { %1036 = vmatpush3.msra.mxu1 %v747_v56 }
 0x13b   : > { %1037 = vmatprep.subr.mxu1 %v1318_v53  ;;  %p1246_p2 = por %p1245_p0, %p1244_p13 }
 0x13c   : > { %1038 = vmatpush3.msra.mxu1 %v746_v57 }
 0x13d   : > { %p1247_p10 = pnand %p1246_p2, %p1240_p9 }
 0x1a4   : > { %v586_v15 = vpop.permute.xlu0 %585 }
 0x1a5   : > { %1021 = vmatprep.subr.mxu0 %v586_v15 }
 0x1a6   : > { %1022 = vmatpush3.msra.mxu0 %v586_v15 }
 0x1a8   : > { %v584_v16 = vpop.permute.xlu0 %583 }
 0x1a9   : > { %1023 = vmatprep.subr.mxu0 %v584_v16 }
 0x1aa   : > { %1024 = vmatpush3.msra.mxu0 %v584_v16 }
 0x1f5   : > { %v1020_v17 = vpop.f32.mrf.mxu1 }
 0x1f6   : > { %v522_v19 = vsel %vm354_vm0, %v1020_v17, -inf }
 0x1f7   : > { %v512_v18 = vpop.f32.mrf.mxu1 }
 0x1f8   : > { %v521_v20 = vsel %vm354_vm0, %v512_v18, -inf }
 0x1f9   : > { %v523_v21 = vmax.f32 %v521_v20, %v522_v19 }
 0x1fb   : > { %v524_v22 = vrot.slane %v523_v21, 4 }
 0x1fd   : > { %v525_v23 = vmax.f32 %v523_v21, %v524_v22 }
 0x1ff   : > { %v526_v24 = vrot.slane %v525_v23, 2 }
 0x201   : > { %v527_v25 = vmax.f32 %v525_v23, %v526_v24 }
 0x203   : > { %v528_v26 = vrot.slane %v527_v25, 1 }
 0x205   : > { %v529_v27 = vmax.f32 %v527_v25, %v528_v26 }
 0x207   : > { %v530_v28 = vsub.f32 %v512_v18, %v529_v27  ;;  %v531_v29 = vsub.f32 %v1020_v17, %v529_v27  ;;  %v969_v27 = vld [vmem:[%s1596_s6] ss:$0 sm:$0xff] }
 0x209   : > { %v532_v30 = vmul.f32 1.442695, %v530_v28  ;;  %v534_v31 = vmul.f32 1.442695, %v531_v29 }
 0x20b   : > { %1125 = vpow2.f32 %v532_v30 }
 0x20c   : > { %1127 = vpow2.f32 %v534_v31 }
 0x218   : > { %v1126_v32 = vpop.eup %1125 }
 0x219   : > { %v1128_v33 = vpop.eup %1127  ;;  %v536_v34 = vsel %vm354_vm0, %v1126_v32, 0.0 }
 0x21a   : > { %v537_v35 = vsel %vm354_vm0, %v1128_v33, 0.0 }
 0x21b   : > { %v538_v36 = vadd.f32 %v537_v35, %v536_v34 }
 0x21d   : > { %v539_v37 = vrot.slane %v538_v36, 4 }
 0x21f   : > { %v540_v38 = vadd.f32 %v539_v37, %v538_v36 }
 0x221   : > { %v541_v39 = vrot.slane %v540_v38, 2 }
 0x223   : > { %v542_v40 = vadd.f32 %v541_v39, %v540_v38 }
 0x225   : > { %v543_v41 = vrot.slane %v542_v40, 1 }
 0x227   : > { %v544_v42 = vadd.f32 %v543_v41, %v542_v40 }
 0x229   : > { %1129 = vrcp.f32 %v544_v42 }
 0x236   : > { %v1130_v43 = vpop.eup %1129 }
 0x237   : > { %v546_v44 = vmul.f32 %v1130_v43, %v544_v42 }
 0x239   : > { %v547_v45 = vsub.f32 2.0, %v546_v44 }
 0x23b   : > { %v548_v46 = vmul.f32 %v1130_v43, %v547_v45 }
 0x23d   : > { %v549_v47 = vmul.f32 %v1126_v32, %v548_v46  ;;  %v550_v48 = vmul.f32 %v1128_v33, %v548_v46 }
 0x23f   : > { %551 = vxpose.xlu1.b32.start [1/2] (short) (narrow) %v549_v47, 32 }
 0x243   : > { %552 = vxpose.xlu1.b32.end [2/2] (short) (narrow) %v550_v48, 32 }
 0x2bb   : > { %v567_v49 = vpop.trf.xlu1 }
 0x2bc   : > { %1025 = vmatprep.mubr.msk.f32.mxu0 %vm589_vm1, %v567_v49 }
 0x2bf   : > { %v568_v50 = vpop.trf.xlu1 }
 0x2c0   : > { %1026 = vmatmul.mubr.msk.f32.vlgmr.msra.gmra.mxu0 %vm589_vm1, %v568_v50 }
 0x2c3   : > { %v569_v51 = vpop.trf.xlu1 }
 0x2c4   : > { %1028 = vmatprep.mubr.msk.f32.mxu0 %vm589_vm1, %v569_v51 }
 0x2c7   : > { %v570_v52 = vpop.trf.xlu1 }
 0x2c8   : > { %1029 = vmatmul.mubr.msk.f32.gmra.mxu0 %vm589_vm1, %v570_v52 }
 0x380   : > { %v1027_v5 = vpop.f32.mrf.mxu0 }
 0x381   : > { %v734_v12 = vmul.f32 %v1027_v5, %v720_v8 }
 0x382   : > { %v668_v7 = vpop.f32.mrf.mxu0 }
 0x383   : > { %v733_v11 = vmul.f32 %v716_v6, %v668_v7  ;;  %v738_v18 = vsel %vm354_vm0, %v734_v12, 0.0 }
 0x385   : > { %v737_v16 = vsel %vm354_vm0, %v733_v11, 0.0 }
 0x386   : > { %v739_v21 = vadd.f32 %v738_v18, %v737_v16 }
 0x388   : > { %v1030_v15 = vpop.f32.mrf.mxu0 }
 0x389   : > { %v736_v19 = vmul.f32 %v1030_v15, %v728_v13 }
 0x38a   : > { %v678_v17 = vpop.f32.mrf.mxu0 }
 0x38b   : > { %v735_v20 = vmul.f32 %v724_v14, %v678_v17  ;;  %v742_v24 = vsel %vm354_vm0, %v736_v19, 0.0 }
 0x38d   : > { %v740_v22 = vsel %vm354_vm0, %v735_v20, 0.0 }
 0x38e   : > { %v741_v23 = vadd.f32 %v740_v22, %v739_v21 }
 0x390   : > { %v743_v25 = vadd.f32 %v742_v24, %v741_v23 }
 0x392   : > { %744 = vst.msk [vmem:[#allocation2] sm:$0xff] %vm354_vm0, %v743_v25 }
 0x399   : > { %v745_v26 = vld [vmem:[#allocation2] sm:$0xff] }
 0x39a   : > { %1040 = vmatmul.mubr.msk.f32.vlgmr.msra.gmra.mxu1 %vm354_vm0, %v745_v26 }
 0x45a   : > { %v826_v28 = vpop.f32.mrf.mxu1 }
 0x45b   : > { %v827_v29 = vadd.f32 %v969_v27, %v826_v28 }
 0x45c   : > { %v1041_v30 = vpop.f32.mrf.mxu1 }
 0x45d   : > { %830 = vst [vmem:[%s340_s18] sm:$0xff] %v827_v29 }
 0x45e   : > { %1250 = shalt.err (!%p1247_p10)
}
 0x45f   : > { %s1251_s12 = scalar_lea.hbm %s1553_s29, 128  ;;  %s1255_s11 = scalar_lea.hbm %s1597_s7, 256 }
 0x460   : > { %p1252_p6 = scmp.ne.s32.totalorder %s1553_s29, %s1251_s12  ;;  %p1256_p3 = scmp.lt.s32.totalorder %s1553_s29, %s1597_s7 }
 0x461   : > { %p1257_p11 = scmp.lt.s32.totalorder %s1255_s11, %s1251_s12 }
 0x462   : > { %p1253_p4 = pnand %p1252_p6, %p1620_p1 }
 0x463   : > { %p1258_p5 = por %p1257_p11, %p1256_p3 }
 0x464   : > { %p1254_p8 = pneg %p1253_p4 }
 0x466   : > { %p1259_p7 = pnand %p1258_p5, %p1254_p8 }
 0x468   : > { %1262 = shalt.err (!%p1259_p7)
}
 0x469   : > { %1056 = dma.vmem_to_hbm [thread:$0]  (%p1620_p1), %s846_s23, 128, %s1553_s29, %s832_s30  }
 0x46a PF: > { %s857_s18 = sand.u32 1, %s1297_s24   ;;  %p1621_p12 = scmp.ne.s32.totalorder %s1606_s8, 0 }
 0x46b   : > { %p1622_p9 = scmp.ge.s32.totalorder %s1309_s27, 2  ;;  %s858_s1 = scalar_lea.sflag [#allocation5], %s857_s18 }
 0x46d   : > { %p1073_p13 = pnand %p1622_p9, %p1621_p12 }
 0x46f   : > { %p1074_p0 = pneg %p1073_p13 }
 0x471   : > { %1292 = dma.done.wait (%p1074_p0), %s858_s1, 128  }
 0x472   : > { %1294 = vsyncadd (%p1074_p0), %s858_s1, 4294967168  ;;  %p22_p2 = scmp.ge.s32.totalorder %s1451_s14, 4   ;;  %s1623_s24 = smov %s1301_s25 }
 0x473   : > { %s1624_s25 = smov %s1305_s26  ;;  %s1625_s26 = smov %s1461_s17 }
 0x474   : > { %s1626_s27 = smov %s1451_s14  ;;  %24 = sbr.rel (!%p22_p2) target bundleno = 9 (0x9), region = 105 }
 0x479   :  { %863 = vsyncpa [#allocation4], 1 }
 0x47a   :  { %865 = vsyncpa [#allocation4 + $0x1], 1 }
 0x47b   :  { %866 = vsyncpa [#allocation7], 1 }
 0x47c   :  { %867 = vsyncpa [#allocation10], 1 }
 0x47d   :  { %868 = vsyncpa [#allocation5], 1 }
 0x47e   :  { %870 = vsyncpa [#allocation5 + $0x1], 1 }

</bundles_post_ra>
